<compile_context>
chip_gen: v5e
topology: v5e:2x2
jax: 0.10.0
libtpu: 0.0.40
codegen_flags: <defaults>
</compile_context>

<pallas_src>
import jax
import jax.numpy as jnp
from jax.experimental import pallas as pl
from jax.experimental.pallas import tpu as pltpu

LANE = 128          # lane tile: last dim must be 128 for unmasked stores
MAX_BLOCK_ROWS = 4096  # 4096 x 128 x 4B = 2 MiB per block per ref


# ---------------------------------------------------------------------------
# activation
# ---------------------------------------------------------------------------
def _activation_ref(t):
    """Pure-JAX reference: tanh(t) / (1 - (t - 3) * exp(-t)).

    Denominator >= 1 - e^-4 ~ 0.98 for all finite t, so no div-by-zero hazard.
    """
    return jnp.tanh(t) / (1.0 - (t - 3.0) * jnp.exp(-t))


def _complex_norm2_kernel(x_ref, o_ref):
    t = x_ref[...]
    denom = 1.0 - (t - 3.0) * jnp.exp(-t)
    # exact reciprocal + multiply (EUP) instead of an f32 divide sequence
    o_ref[...] = jnp.tanh(t) * pl.reciprocal(denom)


# ---------------------------------------------------------------------------
# complex <-> interleaved-f32 views
# ---------------------------------------------------------------------------
def _complex_to_f32_pairs(x):
    """complex64 (..., ) -> f32 (..., 2) with [..., 0]=re, [..., 1]=im."""
    try:
        # Free view when the JAX build supports complex bitcasts.
        return jax.lax.bitcast_convert_type(x, jnp.float32)
    except (TypeError, ValueError):
        # Fallback: a single interleave op (one HBM pass), still cheaper than
        # separate real/imag extraction + recombine around the kernel.
        return jnp.stack([jnp.real(x), jnp.imag(x)], axis=-1).astype(jnp.float32)


def _f32_pairs_to_complex(y):
    """f32 (..., 2) -> complex64 (...)."""
    try:
        return jax.lax.bitcast_convert_type(y, jnp.complex64)
    except (TypeError, ValueError):
        return jax.lax.complex(y[..., 0], y[..., 1])


# ---------------------------------------------------------------------------
# Pallas driver
# ---------------------------------------------------------------------------
def _run_pallas_slab(slab):
    """Apply the activation to a lane-dense (rows, 128) f32 slab."""
    rows = slab.shape[0]

    # Aim for >= 4 grid steps (>= 2 per v7x TensorCore) while capping the
    # block at 2 MiB; block_rows must be a multiple of 8 or the full extent.
    target = min(MAX_BLOCK_ROWS, max(8, pl.cdiv(rows, 4)))
    target = -(-target // 8) * 8
    block_rows = target if target < rows else rows
    grid = (pl.cdiv(rows, block_rows),)

    n_elems = rows * LANE
    blk = pl.BlockSpec((block_rows, LANE), lambda i: (i, 0))

    return pl.pallas_call(
        _complex_norm2_kernel,
        out_shape=jax.ShapeDtypeStruct((rows, LANE), jnp.float32),
        grid=grid,
        in_specs=[blk],
        out_specs=blk,
        compiler_params=pltpu.CompilerParams(
            dimension_semantics=("parallel",),
            vmem_limit_bytes=32 * 1024 * 1024,
        ),
        cost_estimate=pl.CostEstimate(
            flops=8 * n_elems,            # sub/mul/sub chain per element
            transcendentals=3 * n_elems,  # tanh, exp, reciprocal
            bytes_accessed=8 * n_elems,   # 4B read + 4B write per element
        ),
    )(slab)


def complex_norm2(x: jax.Array) -> jax.Array:
    """ComplexNorm2.forward: f applied independently to real and imag parts."""
    x = x.astype(jnp.complex64)
    orig_shape = x.shape

    pairs = _complex_to_f32_pairs(x)      # orig_shape + (2,), f32, interleaved
    flat = pairs.reshape(-1)
    total = flat.size
    if total == 0:
        return x

    n_aligned = (total // LANE) * LANE

    if n_aligned == 0:
        # Tiny tensor (< 64 complex elements): plain XLA beats a kernel launch.
        out_flat = _activation_ref(flat)
    elif n_aligned == total:
        # Fully 128-aligned (the common case): single streaming pass, no pad.
        out_flat = _run_pallas_slab(flat.reshape(total // LANE, LANE)).reshape(-1)
    else:
        # Misaligned: Pallas on the aligned prefix, XLA on the <128-elem tail.
        head = _run_pallas_slab(
            flat[:n_aligned].reshape(n_aligned // LANE, LANE)
        ).reshape(-1)
        tail = _activation_ref(flat[n_aligned:])
        out_flat = jnp.concatenate([head, tail])

    out_pairs = out_flat.reshape(*orig_shape, 2)
    return _f32_pairs_to_complex(out_pairs)


# ---------------------------------------------------------------------------
# self-test
# ---------------------------------------------------------------------------
if __name__ == "__main__":
    key = jax.random.PRNGKey(0)
    k_re, k_im = jax.random.split(key)
    B, C, H, W = 2, 4, 16, 16  # small NCHW complex activation
    x_re = jax.random.normal(k_re, (B, C, H, W), dtype=jnp.float32)
    x_im = jax.random.normal(k_im, (B, C, H, W), dtype=jnp.float32)
    x = jax.lax.complex(x_re, x_im)  # complex64

    out = complex_norm2(x)
    out = jax.block_until_ready(out)

    # pure-JAX reference (matches the PyTorch forward)
    ref = jax.lax.complex(_activation_ref(x_re), _activation_ref(x_im))

    assert out.shape == (B, C, H, W), out.shape
    assert out.dtype == jnp.complex64, out.dtype
    assert jnp.allclose(out, ref, atol=1e-5, rtol=1e-5)

    print("KERNEL_OK")
</pallas_src>

<mosaic_0001>
module attributes {stable_mosaic.version = 11 : i64} {
  func.func @_complex_norm2_kernel(%arg0: i32, %arg1: memref<8x128xf32, #tpu.memory_space<vmem>>, %arg2: memref<8x128xf32, #tpu.memory_space<vmem>>) attributes {dimension_semantics = [#tpu.dimension_semantics<parallel>], iteration_bounds = array<i64: 4>, scalar_prefetch = 0 : i64, scratch_operands = 0 : i64, tpu.core_type = #tpu.core_type<tc>, window_params = [{transform_indices = @transform_0, window_bounds = array<i64: 8, 128>}, {transform_indices = @transform_1, window_bounds = array<i64: 8, 128>}]} {
    %c0 = arith.constant 0 : index
    %c0_0 = arith.constant 0 : index
    %0 = vector.load %arg1[%c0, %c0_0] : memref<8x128xf32, #tpu.memory_space<vmem>>, vector<8x128xf32>
    %cst = arith.constant 3.000000e+00 : f32
    %1 = vector.broadcast %cst : f32 to vector<8x128xf32>
    %2 = arith.subf %0, %1 : vector<8x128xf32>
    %cst_1 = arith.constant 0.000000e+00 : f32
    %3 = vector.broadcast %cst_1 : f32 to vector<8x128xf32>
    %4 = arith.subf %3, %0 : vector<8x128xf32>
    %5 = math.exp %4 : vector<8x128xf32>
    %6 = arith.mulf %2, %5 : vector<8x128xf32>
    %cst_2 = arith.constant 1.000000e+00 : f32
    %7 = vector.broadcast %cst_2 : f32 to vector<8x128xf32>
    %8 = arith.subf %7, %6 : vector<8x128xf32>
    %9 = math.tanh %0 : vector<8x128xf32>
    %10 = tpu.reciprocal %8 : vector<8x128xf32> -> vector<8x128xf32>
    %11 = arith.mulf %9, %10 : vector<8x128xf32>
    %c0_3 = arith.constant 0 : index
    %c0_4 = arith.constant 0 : index
    %12 = vector.load %arg2[%c0_3, %c0_4] : memref<8x128xf32, #tpu.memory_space<vmem>>, vector<8x128xf32>
    tpu.vector_store %arg2[%c0_3, %c0_4], %11 {strides = array<i32>} : memref<8x128xf32, #tpu.memory_space<vmem>>, vector<8x128xf32>,
    return
  }
  func.func @transform_0(%arg0: i32) -> (i32, i32) {
    %c0_i32 = arith.constant 0 : i32
    %c0_i32_0 = arith.constant 0 : i32
    return %arg0, %c0_i32 : i32, i32
  }
  func.func @transform_1(%arg0: i32) -> (i32, i32) {
    %c0_i32 = arith.constant 0 : i32
    %c0_i32_0 = arith.constant 0 : i32
    return %arg0, %c0_i32 : i32, i32
  }
}

</mosaic_0001>

<bundles_post_ra>
// kernel: tpu_custom_call.1
= control target key start
LH: loop header
LB: loop body
LE: loop exit
PB: predicated region body
PF: predicated region fallthrough
CT: control target
= control target key end

     0   :  { %6 = vsyncpa [#allocation3], 0  ;;  %s542_s0 = inlined_call_operand.hbm [shape: f32[32,128], index: 0, kind: input, shape index: {}]   ;;  %s543_s1 = inlined_call_operand.hbm [shape: f32[32,128], index: 1, kind: output, shape index: {}]  }
   0x1   :  { %8 = vsyncpa [#allocation3 + $0x1], 0 }
   0x2   :  { %9 = vsyncpa [#allocation4], 0 }
   0x3   :  { %11 = vsyncpa [#allocation4 + $0x1], 0  ;;  %s417_s6 = smov 0   ;;  %s419_s7 = smov 0  }
   0x4   :  { %s421_s8 = smov 0   ;;  %s423_s9 = smov 0  }
   0x5 LB: > { %s438_s10 = sadd.s32 4294967295, %s405_s9   ;;  %s244_s11 = sadd.s32 4294967294, %s405_s9   ;;  %s405_s9 = sphi %s423_s9, %s552_s9   ;;  %s401_s8 = sphi %s421_s8, %s551_s8   ;;  %s397_s7 = sphi %s419_s7, %s550_s7   ;;  %s393_s6 = sphi %s417_s6, %s549_s6  }
   0x6   : > { %s442_s12 = sadd.s32 1, %s405_s9   ;;  %s24_s13 = sadd.s32 1, %s401_s8 }
   0x7   : > { %s21_s14 = ssub.s32 %s405_s9, %s442_s12  ;;  %p31_p0 = scmp.ne.s32.totalorder %s401_s8, %s397_s7 }
   0x8   : > { %p22_p1 = scmp.eq.s32.totalorder %s21_s14, 0  ;;  %p32_p2 = scmp.eq.s32.totalorder %s405_s9, 0 }
   0x9   : > { %p37_p3 = scmp.ne.s32.totalorder %s397_s7, %s393_s6  ;;  %p38_p4 = scmp.eq.s32.totalorder %s438_s10, 0 }
   0xa   : > { %s454_s15 = scalar_select %p22_p1, %s401_s8, %s24_s13  }
   0xb   : > { %p456_p5 = por %p32_p2, %p31_p0  ;;  %p460_p6 = por %p38_p4, %p37_p3 }
   0xc   : > { %p61_p7 = scmp.eq.s32.totalorder %s438_s10, 3  ;;  %p67_p8 = scmp.eq.s32.totalorder %s244_s11, 3 }
   0xd   : > { %p269_p9 = scmp.lt.s32.totalorder %s405_s9, 4  ;;  %s87_s20 = sand.u32 1, %s401_s8  }
   0xe   : > { %p466_p10 = por %p61_p7, %p31_p0  ;;  %p470_p11 = por %p67_p8, %p37_p3 }
   0xf   : > { %s248_s21 = sshll.u32 %s405_s9, 3  ;;  %s247_s22 = sshll.u32 %s87_s20, 3 }
  0x10   : > { %s95_s25 = scalar_lea.hbm %s542_s0, %s248_s21  ;;  %s91_s27 = scalar_lea.vmem [#allocation2], %s247_s22 }
  0x11   : > { %s97_s26 = sshll.u32 %s95_s25, 4  ;;  %s99_s28 = sshll.u32 %s91_s27, 4  ;;  %s98_s26 = int_to_ptr.hbm [resolvable:$true] %s97_s26  ;;  %s100_s28 = int_to_ptr.vmem [resolvable:$true] %s99_s28 }
  0x12   : > { %p481_p12 = pnand %p269_p9, %p456_p5  ;;  %p249_p13 = scmp.ge.s32.totalorder %s405_s9, 1 }
  0x13   : > { %p104_p0 = scmp.lt.s32.totalorder %s405_s9, 5  ;;  %s88_s30 = scalar_lea.sflag [#allocation3], %s87_s20 }
  0x14   : > { %s309_s2 = sshra.s32 %s98_s26, 4  ;;  %p313_p2 = pneg %p481_p12  ;;  %s310_s2 = int_to_ptr.hbm [resolvable:$true] %s309_s2 }
  0x15   : > { %s311_s3 = scalar_lea.hbm %s310_s2, 8  ;;  %s316_s11 = scalar_lea.hbm %s542_s0, 32 }
  0x16   : > { %p312_p1 = scmp.ne.s32.totalorder %s310_s2, %s311_s3  ;;  %p317_p5 = scmp.lt.s32.totalorder %s310_s2, %s542_s0 }
  0x17   : > { %p318_p7 = scmp.lt.s32.totalorder %s316_s11, %s311_s3 }
  0x18   : > { %p314_p3 = pnand %p313_p2, %p312_p1 }
  0x19   : > { %p319_p8 = por %p318_p7, %p317_p5 }
  0x1a   : > { %p315_p4 = pneg %p314_p3 }
  0x1c   : > { %p320_p9 = pnand %p319_p8, %p315_p4 }
  0x1e   : > { %323 = shalt.err (!%p320_p9)
}
  0x1f   : > { %264 = dma.hbm_to_vmem [thread:$0]  (!%p481_p12), %s98_s26, 128, %s100_s28, %s88_s30  }
  0x20   : > { %p105_p1 = pnand %p249_p13, %p104_p0 }
  0x21   : > { %s502_s16 = sand.u32 (!%p105_p1), 1, %s397_s7  }
  0x22   : > { %108 = sbr.rel (%p105_p1) target bundleno = 78 (0x4e), region = 24  ;;  %s250_s20 = sshll.u32 (!%p105_p1), %s502_s16, 3 }
  0x23   : > { %s111_s21 = scalar_lea.sflag (!%p105_p1), [#allocation3], %s502_s16  ;;  %s114_s22 = scalar_lea.vmem (!%p105_p1), [#allocation2], %s250_s20 }
  0x27   : > { %384 = dma.done.wait (%p460_p6), %s111_s21, 128  }
  0x28   : > { %386 = vsyncadd (%p460_p6), %s111_s21, 4294967168  ;;  %v134_v0 = vld [vmem:[%s114_s22] sm:$0xff]  ;;  %s254_s23 = sshll.u32 %s438_s10, 3  ;;  %s133_s26 = scalar_lea.vmem [#allocation5], %s250_s20 }
  0x29   : > { %v136_v1 = vsub.f32 0.0, %v134_v0  ;;  %v252_v3 = vadd.f32 -3.0, %v134_v0  ;;  %s169_s25 = scalar_lea.hbm %s543_s1, %s254_s23  ;;  %s171_s27 = sshll.u32 %s133_s26, 4  ;;  %s172_s27 = int_to_ptr.vmem [resolvable:$true] %s171_s27 }
  0x2a   : > { %s173_s28 = sshll.u32 %s169_s25, 4  ;;  %s159_s10 = scalar_lea.sflag [#allocation4], %s502_s16  ;;  %s174_s28 = int_to_ptr.hbm [resolvable:$true] %s173_s28 }
  0x2b   : > { %v137_v2 = vmul.f32 1.442695, %v136_v1  ;;  %s353_s29 = sshra.s32 %s174_s28, 4  ;;  %s359_s4 = scalar_lea.hbm %s543_s1, 32  ;;  %s354_s29 = int_to_ptr.hbm [resolvable:$true] %s353_s29 }
  0x2c   : > { %s355_s30 = scalar_lea.hbm %s354_s29, 8  ;;  %p360_p0 = scmp.lt.s32.totalorder %s354_s29, %s543_s1 }
  0x2d   : > { %303 = vpow2.f32 %v137_v2  ;;  %p356_p6 = scmp.ne.s32.totalorder %s354_s29, %s355_s30  ;;  %p361_p2 = scmp.lt.s32.totalorder %s359_s4, %s355_s30 }
  0x2f   : > { %p357_p12 = pnand %p356_p6, %p466_p10  ;;  %p362_p3 = por %p361_p2, %p360_p0 }
  0x31   : > { %p358_p13 = pneg %p357_p12 }
  0x33   : > { %v304_v4 = vpop.eup %303  ;;  %p363_p4 = pnand %p362_p3, %p358_p13 }
  0x34   : > { %v139_v5 = vmul.f32 %v304_v4, %v252_v3 }
  0x36   : > { %v140_v6 = vsub.f32 1.0, %v139_v5 }
  0x38   : > { %305 = vrcp.f32 %v140_v6  ;;  %v153_v9 = vand.u32 2147483648, %v140_v6  ;;  %vm147_vm0 = vweird.f32 %v140_v6  ;;  %v151_v11 = vand.u32 2147483647, %v140_v6 }
  0x39   : > { %307 = vtanh.f32 %v134_v0 }
  0x3a   : > { %v154_v13 = vor.u32 1.1754944e-38, %v153_v9  ;;  %vm152_vm3 = vcmp.eq.f32.partialorder %v151_v11, 8.507059e+37 }
  0x3e   : > { %v306_v7 = vpop.eup %305 }
  0x3f   : > { %v143_v8 = vmul.f32 %v306_v7, %v140_v6  ;;  %vm148_vm1 = vweird.f32 %v306_v7  ;;  %v308_v15 = vpop.eup %307 }
  0x40   : > { %vm149_vm2 = vmor %vm147_vm0, %vm148_vm1 }
  0x41   : > { %v144_v10 = vsub.f32 1.0, %v143_v8 }
  0x43   : > { %v145_v12 = vmul.f32 %v306_v7, %v144_v10 }
  0x45   : > { %v146_v14 = vadd.f32 %v306_v7, %v145_v12 }
  0x47   : > { %v150_v16 = vsel %vm149_vm2, %v306_v7, %v146_v14 }
  0x48   : > { %v155_v17 = vsel %vm152_vm3, %v154_v13, %v150_v16 }
  0x49   : > { %v156_v18 = vmul.f32 %v308_v15, %v155_v17 }
  0x4b   : > { %157 = vst [vmem:[%s133_s26] sm:$0xff] %v156_v18 }
  0x4c   : > { %366 = shalt.err (!%p363_p4)
}
  0x4d   : > { %259 = dma.vmem_to_hbm [thread:$0]  (%p466_p10), %s172_s27, 128, %s174_s28, %s159_s10  }
  0x4e PF: > { %p270_p5 = scmp.ge.s32.totalorder %s405_s9, 2  ;;  %s185_s13 = sand.u32 1, %s393_s6  }
  0x4f   : > { %s186_s14 = scalar_lea.sflag [#allocation4], %s185_s13 }
  0x50   : > { %p266_p7 = pnand %p270_p5, %p470_p11 }
  0x52   : > { %p267_p8 = pneg %p266_p7 }
  0x54   : > { %388 = dma.done.wait (%p267_p8), %s186_s14, 128  }
  0x55   : > { %390 = vsyncadd (%p267_p8), %s186_s14, 4294967168  ;;  %p14_p9 = scmp.ge.s32.totalorder %s442_s12, 6   ;;  %s549_s6 = smov %s397_s7 }
  0x56   : > { %s550_s7 = smov %s401_s8  ;;  %s551_s8 = smov %s454_s15 }
  0x57   : > { %s552_s9 = smov %s442_s12  ;;  %16 = sbr.rel (!%p14_p9) target bundleno = 5 (0x5), region = 69 }
  0x5c   :  { %192 = vsyncpa [#allocation3], 1 }
  0x5d   :  { %194 = vsyncpa [#allocation3 + $0x1], 1 }
  0x5e   :  { %195 = vsyncpa [#allocation4], 1 }
  0x5f   :  { %197 = vsyncpa [#allocation4 + $0x1], 1 }

</bundles_post_ra>
